<compile_context>
chip_gen: v7x
topology: tpu7x:2x2x1
jax: 0.10.0
libtpu: 0.0.40
codegen_flags: <defaults>
</compile_context>

<pallas_src>
import math

import numpy as np

import jax
import jax.numpy as jnp
from jax.experimental import pallas as pl
from jax.experimental.pallas import tpu as pltpu

LANE = 128


# ----------------------------------------------------------------------------
# helpers
# ----------------------------------------------------------------------------
def _rup(x, m):
    return ((x + m - 1) // m) * m


def _pad2(a, rows, cols):
    r, c = a.shape
    return jnp.pad(a, ((0, rows - r), (0, cols - c)))


def _vmem_limit_bytes():
    cap = 64 * 1024 * 1024
    try:
        info = pltpu.get_tpu_info()
        cap = int(getattr(info, "vmem_capacity_bytes", cap) or cap)
    except Exception:
        pass
    # leave headroom for scratch/accumulators; cap well below physical
    return min((cap * 3) // 4, 96 * 1024 * 1024)


def _compiler_params(dim_sem):
    return pltpu.CompilerParams(
        dimension_semantics=dim_sem,
        vmem_limit_bytes=_vmem_limit_bytes(),
    )


def _adj_block_spec(tm, tk, index_map):
    """Adj tile spec; triple-buffer the dominant (bursty) HBM stream."""
    try:
        return pl.BlockSpec((tm, tk), index_map, pipeline_mode=pl.Buffered(3))
    except (TypeError, AttributeError):
        # older jax without pipeline_mode / Buffered: default double buffering
        return pl.BlockSpec((tm, tk), index_map)


def _build_block_meta(adj_pad, tm, tk):
    """Per adj row-block: compacted nonzero K-block indices + counts.

    Built entirely on-device (no N^2 device->host transfer, no Python loop);
    only max(cnt) - a single scalar - syncs to the host to size the K grid
    axis statically.  Trailing kidx entries repeat the last valid index so the
    BlockSpec revisits the same block (DMA skipped); compute is guarded by
    `k < cnt[i]` in-kernel.
    """
    nbr = adj_pad.shape[0] // tm
    nbk = adj_pad.shape[1] // tk
    blk = jnp.any((adj_pad != 0).reshape(nbr, tm, nbk, tk), axis=(1, 3))
    cnt = jnp.sum(blk, axis=1).astype(jnp.int32)
    # nonzero block indices first (their internal order does not affect math)
    order = jnp.argsort((~blk).astype(jnp.int32), axis=1).astype(jnp.int32)
    j = jnp.arange(nbk, dtype=jnp.int32)
    last = jnp.take_along_axis(order, jnp.maximum(cnt - 1, 0)[:, None], axis=1)
    kidx = jnp.where(j[None, :] < cnt[:, None], order, last)
    nbk_used = max(int(jnp.max(cnt)), 1)   # tiny host sync (one scalar)
    return kidx[:, :nbk_used], cnt


# ----------------------------------------------------------------------------
# kernel 1: S1 = x @ W1   (row-tiled, K-tiled over the feature dim)
# ----------------------------------------------------------------------------
def _feat_matmul_kernel(x_ref, w_ref, o_ref, acc_ref):
    f = pl.program_id(1)

    @pl.when(f == 0)
    def _init():
        acc_ref[...] = jnp.zeros_like(acc_ref)

    acc_ref[...] += jnp.dot(
        x_ref[...], w_ref[...], preferred_element_type=jnp.float32
    )

    @pl.when(f == pl.num_programs(1) - 1)
    def _finish():
        o_ref[...] = acc_ref[...].astype(o_ref.dtype)


def _feat_matmul(x, w, tm, tf, out_dtype):
    Np, Fp = x.shape
    _, Hp = w.shape
    return pl.pallas_call(
        _feat_matmul_kernel,
        out_shape=jax.ShapeDtypeStruct((Np, Hp), out_dtype),
        grid_spec=pltpu.PrefetchScalarGridSpec(
            num_scalar_prefetch=0,
            grid=(Np // tm, Fp // tf),
            in_specs=[
                pl.BlockSpec((tm, tf), lambda i, f: (i, f)),
                pl.BlockSpec((tf, Hp), lambda i, f: (f, 0)),
            ],
            out_specs=pl.BlockSpec((tm, Hp), lambda i, f: (i, 0)),
            scratch_shapes=[pltpu.VMEM((tm, Hp), jnp.float32)],
        ),
        compiler_params=_compiler_params(("parallel", "arbitrary")),
    )(x, w)


# ----------------------------------------------------------------------------
# kernel 2 (fused gc1 + h1@W2):  S2 = relu(adj @ S1) @ W2
# K-tiled adj contraction, block-sparse skip, bf16xbf16 MXU, f32 accumulation.
# ----------------------------------------------------------------------------
def _gc1_fused_kernel(kidx_ref, cnt_ref, adj_ref, s1_ref, w2_ref, o_ref, acc_ref):
    i = pl.program_id(0)
    k = pl.program_id(1)

    @pl.when(k == 0)
    def _init():
        acc_ref[...] = jnp.zeros_like(acc_ref)

    @pl.when(k < cnt_ref[i])
    def _accum():
        # operands go to the MXU in their native (bf16 or f32) dtype
        acc_ref[...] += jnp.dot(
            adj_ref[...], s1_ref[...], preferred_element_type=jnp.float32
        )

    @pl.when(k == pl.num_programs(1) - 1)
    def _finish():
        h1 = jnp.maximum(acc_ref[...], 0.0)  # relu (gc1 activation)
        o_ref[...] = jnp.dot(
            h1, w2_ref[...], preferred_element_type=jnp.float32
        ).astype(o_ref.dtype)


def _gc1_fused(adj_p, s1, w2p, kidx, cnt, tm, tk, out_dtype):
    Np_row = adj_p.shape[0]
    H1p = s1.shape[1]
    H2p = w2p.shape[1]
    nbk = kidx.shape[1]
    return pl.pallas_call(
        _gc1_fused_kernel,
        out_shape=jax.ShapeDtypeStruct((Np_row, H2p), out_dtype),
        grid_spec=pltpu.PrefetchScalarGridSpec(
            num_scalar_prefetch=2,
            grid=(Np_row // tm, nbk),
            in_specs=[
                _adj_block_spec(tm, tk, lambda i, k, kidx, cnt: (i, kidx[i, k])),
                pl.BlockSpec((tk, H1p), lambda i, k, kidx, cnt: (kidx[i, k], 0)),
                pl.BlockSpec((H1p, H2p), lambda i, k, kidx, cnt: (0, 0)),
            ],
            out_specs=pl.BlockSpec((tm, H2p), lambda i, k, kidx, cnt: (i, 0)),
            scratch_shapes=[pltpu.VMEM((tm, H1p), jnp.float32)],
        ),
        compiler_params=_compiler_params(("parallel", "arbitrary")),
    )(kidx, cnt, adj_p, s1, w2p)


# ----------------------------------------------------------------------------
# kernel 3: z = adj @ S2   (same structure, identity activation, f32 output)
# ----------------------------------------------------------------------------
def _adj_spmm_kernel(kidx_ref, cnt_ref, adj_ref, s_ref, o_ref, acc_ref):
    i = pl.program_id(0)
    k = pl.program_id(1)

    @pl.when(k == 0)
    def _init():
        acc_ref[...] = jnp.zeros_like(acc_ref)

    @pl.when(k < cnt_ref[i])
    def _accum():
        acc_ref[...] += jnp.dot(
            adj_ref[...], s_ref[...], preferred_element_type=jnp.float32
        )

    @pl.when(k == pl.num_programs(1) - 1)
    def _finish():
        o_ref[...] = acc_ref[...].astype(o_ref.dtype)


def _adj_spmm(adj_p, s, kidx, cnt, tm, tk):
    Np_row = adj_p.shape[0]
    Hp = s.shape[1]
    nbk = kidx.shape[1]
    return pl.pallas_call(
        _adj_spmm_kernel,
        out_shape=jax.ShapeDtypeStruct((Np_row, Hp), jnp.float32),
        grid_spec=pltpu.PrefetchScalarGridSpec(
            num_scalar_prefetch=2,
            grid=(Np_row // tm, nbk),
            in_specs=[
                _adj_block_spec(tm, tk, lambda i, k, kidx, cnt: (i, kidx[i, k])),
                pl.BlockSpec((tk, Hp), lambda i, k, kidx, cnt: (kidx[i, k], 0)),
            ],
            out_specs=pl.BlockSpec((tm, Hp), lambda i, k, kidx, cnt: (i, 0)),
            scratch_shapes=[pltpu.VMEM((tm, Hp), jnp.float32)],
        ),
        compiler_params=_compiler_params(("parallel", "arbitrary")),
    )(kidx, cnt, adj_p, s)


# ----------------------------------------------------------------------------
# module-level forward
# ----------------------------------------------------------------------------
def xavier_uniform(key, fan_in, fan_out):
    """torch.nn.init.xavier_uniform_ equivalent (gain=1)."""
    limit = math.sqrt(6.0 / (fan_in + fan_out))
    return jax.random.uniform(
        key, (fan_in, fan_out), dtype=jnp.float32, minval=-limit, maxval=limit
    )


def gcn_model_ae_forward(x, adj, w1, w2, *, tm=512, tk=1024, tf=512,
                         use_bf16=True):
    """GCNModelAE.forward (eval mode): returns (z, z, None).

    use_bf16=True streams adj / x / W1 / S1 / S2 in bfloat16 (f32 accumulation
    on the MXU) - a documented numerical deviation from the f32 PyTorch module.
    use_bf16=False keeps everything f32 (slower, module-exact numerics).
    """
    N, F = x.shape
    H1 = w1.shape[1]
    H2 = w2.shape[1]
    cdt = jnp.bfloat16 if use_bf16 else jnp.float32

    # --- TPU-friendly tile sizes ---------------------------------------------
    Np0 = _rup(N, LANE)
    tm = max(LANE, min(_rup(tm, LANE), Np0))
    if Np0 >= 2 * LANE:                                   # keep >=2 row blocks
        tm = min(tm, (Np0 // 2) // LANE * LANE)           # (v7x megacore)
    tk = max(tm, (min(_rup(tk, LANE), Np0) // tm) * tm)   # tk multiple of tm
    Fp0 = _rup(F, LANE)
    tf = max(LANE, min(_rup(tf, LANE), Fp0))
    Fp = _rup(F, tf)
    H1p, H2p = _rup(H1, LANE), _rup(H2, LANE)

    # --- asymmetric padding: adj rows -> tm, adj cols (= S1/S2 rows) -> tk ---
    Np_row = _rup(N, tm)
    Np_col = _rup(N, tk)          # multiple of tk (hence of tm); >= Np_row

    xp = _pad2(x.astype(cdt), Np_col, Fp)
    w1p = _pad2(w1.astype(cdt), Fp, H1p)
    w2p = _pad2(w2.astype(jnp.float32), H1p, H2p)         # tiny; keep f32
    adjp = _pad2(adj.astype(cdt), Np_row, Np_col)          # cast BEFORE padding

    # --- block-sparsity metadata (device-side, scalar-prefetched into SMEM) --
    kidx, cnt = _build_block_meta(adjp, tm, tk)

    # --- three pallas_calls ---------------------------------------------------
    s1 = _feat_matmul(xp, w1p, tm, tf, cdt)                     # x @ W1
    s2 = _gc1_fused(adjp, s1, w2p, kidx, cnt, tm, tk, cdt)      # relu(adj@S1)@W2
    if Np_col > Np_row:
        # zero rows for the padded adj columns (never referenced by nonzero
        # blocks, but keep the buffer well-defined)
        s2 = jnp.pad(s2, ((0, Np_col - Np_row), (0, 0)))
    zp = _adj_spmm(adjp, s2, kidx, cnt, tm, tk)                 # adj @ S2

    z = zp[:N, :H2]
    return z, z, None


# ----------------------------------------------------------------------------
# demo / self-check
# ----------------------------------------------------------------------------
if __name__ == "__main__":
    N = 520                      # not a tile multiple -> exercises all padding
    input_feat_dim = 64
    hidden_dim1 = 32
    hidden_dim2 = 16

    key = jax.random.PRNGKey(0)
    kx, kadj, kw1, kw2 = jax.random.split(key, 4)

    x = jax.random.normal(kx, (N, input_feat_dim), dtype=jnp.float32)

    # Banded random graph (locality -> some all-zero adj blocks, exercising the
    # block-sparse skip path), symmetrized, self-loops, row-normalized.
    band = 16
    ii = jnp.arange(N)
    in_band = jnp.abs(ii[:, None] - ii[None, :]) <= band
    rnd = jax.random.uniform(kadj, (N, N)) < 0.15
    a_raw = jnp.where(in_band & rnd, 1.0, 0.0).astype(jnp.float32)
    a_sym = jnp.maximum(a_raw, a_raw.T) + jnp.eye(N, dtype=jnp.float32)
    deg = jnp.sum(a_sym, axis=1, keepdims=True)
    adj = a_sym / deg

    w1 = xavier_uniform(kw1, input_feat_dim, hidden_dim1)
    w2 = xavier_uniform(kw2, hidden_dim1, hidden_dim2)

    # ---- f64 references ------------------------------------------------------
    xn = np.asarray(x, np.float64)
    w1n = np.asarray(w1, np.float64)
    w2n = np.asarray(w2, np.float64)
    adjn = np.asarray(adj, np.float64)
    h1_f = np.maximum(adjn @ (xn @ w1n), 0.0)
    z_f = adjn @ (h1_f @ w2n)                       # pure-f32 module semantics

    def bq(a):  # bf16 round-trip, emulating the kernels' quantization points
        return np.asarray(
            jnp.asarray(a, jnp.float32).astype(jnp.bfloat16).astype(jnp.float32),
            np.float64)

    xq, w1q, adjq = bq(x), bq(w1), bq(adj)
    s1q = bq(xq @ w1q)
    h1q = np.maximum(adjq @ s1q, 0.0)
    s2q = bq(h1q @ w2n)
    z_q = adjq @ s2q                                # quantization-matched ref

    # ---- Run A: exact f32 path, small tiles (multi-block + block-skip) ------
    zA, zA2, noneA = gcn_model_ae_forward(
        x, adj, w1, w2, tm=128, tk=128, tf=128, use_bf16=False)
    jax.block_until_ready(zA)
    assert zA.shape == (N, hidden_dim2)
    assert noneA is None
    zAn = np.asarray(zA, np.float64)
    assert np.allclose(zAn, z_f, atol=5e-3, rtol=5e-3)
    assert np.array_equal(np.asarray(zA2), np.asarray(zA))

    # ---- Run B: production bf16 path, default tiles (asymmetric padding) ----
    zB, zB2, noneB = gcn_model_ae_forward(x, adj, w1, w2, use_bf16=True)
    jax.block_until_ready(zB)
    assert zB.shape == (N, hidden_dim2)
    assert noneB is None
    zBn = np.asarray(zB, np.float64)
    # matches the bf16-quantized computation chain tightly
    assert np.allclose(zBn, z_q, atol=2e-2, rtol=2e-2)
    # loosened tolerance vs the pure-f32 module (documented bf16 deviation)
    assert np.allclose(zBn, z_f, atol=1e-1, rtol=5e-2)
    assert np.array_equal(np.asarray(zB2), np.asarray(zB))

    print("KERNEL_OK")
</pallas_src>

<mosaic_0001>
module attributes {stable_mosaic.version = 11 : i64} {
  func.func @_feat_matmul_kernel(%arg0: i32, %arg1: i32, %arg2: memref<128x128xf32, #tpu.memory_space<vmem>>, %arg3: memref<128x128xf32, #tpu.memory_space<vmem>>, %arg4: memref<128x128xf32, #tpu.memory_space<vmem>>, %arg5: memref<128x128xf32, #tpu.memory_space<vmem>>) attributes {dimension_semantics = [#tpu.dimension_semantics<parallel>, #tpu.dimension_semantics<arbitrary>], iteration_bounds = array<i64: 5, 1>, scalar_prefetch = 0 : i64, scratch_operands = 1 : i64, tpu.core_type = #tpu.core_type<tc>, window_params = [{transform_indices = @transform_0, window_bounds = array<i64: 128, 128>}, {transform_indices = @transform_1, window_bounds = array<i64: 128, 128>}, {transform_indices = @transform_2, window_bounds = array<i64: 128, 128>}]} {
    %c0_i32 = arith.constant 0 : i32
    %0 = arith.cmpi eq, %arg1, %c0_i32 : i32
    %1 = arith.extui %0 : i1 to i32
    %c0_i32_0 = arith.constant 0 : i32
    %2 = arith.cmpi ne, %1, %c0_i32_0 : i32
    scf.if %2 {
      %cst_10 = arith.constant 0.000000e+00 : f32
      %12 = vector.broadcast %cst_10 : f32 to vector<128x128xf32>
      %c0_11 = arith.constant 0 : index
      %c0_12 = arith.constant 0 : index
      %13 = vector.load %arg5[%c0_11, %c0_12] : memref<128x128xf32, #tpu.memory_space<vmem>>, vector<128x128xf32>
      tpu.vector_store %arg5[%c0_11, %c0_12], %12 {strides = array<i32>} : memref<128x128xf32, #tpu.memory_space<vmem>>, vector<128x128xf32>,
    } else {
    }
    %c0 = arith.constant 0 : index
    %c0_1 = arith.constant 0 : index
    %3 = vector.load %arg5[%c0, %c0_1] : memref<128x128xf32, #tpu.memory_space<vmem>>, vector<128x128xf32>
    %c0_2 = arith.constant 0 : index
    %c0_3 = arith.constant 0 : index
    %4 = vector.load %arg2[%c0_2, %c0_3] : memref<128x128xf32, #tpu.memory_space<vmem>>, vector<128x128xf32>
    %c0_4 = arith.constant 0 : index
    %c0_5 = arith.constant 0 : index
    %5 = vector.load %arg3[%c0_4, %c0_5] : memref<128x128xf32, #tpu.memory_space<vmem>>, vector<128x128xf32>
    %cst = arith.constant dense<0.000000e+00> : vector<128x128xf32>
    %6 = tpu.matmul %4, %5, %cst {dimension_numbers = #tpu.dot_dimension_numbers<[1], [0], [0], [1], [0, 0, 1, 1], [], []>} : vector<128x128xf32>, vector<128x128xf32>, vector<128x128xf32> -> vector<128x128xf32>
    %7 = arith.addf %3, %6 : vector<128x128xf32>
    %c0_6 = arith.constant 0 : index
    %c0_7 = arith.constant 0 : index
    %8 = vector.load %arg5[%c0_6, %c0_7] : memref<128x128xf32, #tpu.memory_space<vmem>>, vector<128x128xf32>
    tpu.vector_store %arg5[%c0_6, %c0_7], %7 {strides = array<i32>} : memref<128x128xf32, #tpu.memory_space<vmem>>, vector<128x128xf32>,
    %c0_i32_8 = arith.constant 0 : i32
    %9 = arith.cmpi eq, %arg1, %c0_i32_8 : i32
    %10 = arith.extui %9 : i1 to i32
    %c0_i32_9 = arith.constant 0 : i32
    %11 = arith.cmpi ne, %10, %c0_i32_9 : i32
    scf.if %11 {
      %c0_10 = arith.constant 0 : index
      %c0_11 = arith.constant 0 : index
      %12 = vector.load %arg5[%c0_10, %c0_11] : memref<128x128xf32, #tpu.memory_space<vmem>>, vector<128x128xf32>
      %c0_12 = arith.constant 0 : index
      %c0_13 = arith.constant 0 : index
      %13 = vector.load %arg4[%c0_12, %c0_13] : memref<128x128xf32, #tpu.memory_space<vmem>>, vector<128x128xf32>
      tpu.vector_store %arg4[%c0_12, %c0_13], %12 {strides = array<i32>} : memref<128x128xf32, #tpu.memory_space<vmem>>, vector<128x128xf32>,
    } else {
    }
    return
  }
  func.func @transform_0(%arg0: i32, %arg1: i32) -> (i32, i32) {
    %c0_i32 = arith.constant 0 : i32
    return %arg0, %arg1 : i32, i32
  }
  func.func @transform_1(%arg0: i32, %arg1: i32) -> (i32, i32) {
    %c0_i32 = arith.constant 0 : i32
    %c0_i32_0 = arith.constant 0 : i32
    return %arg1, %c0_i32 : i32, i32
  }
  func.func @transform_2(%arg0: i32, %arg1: i32) -> (i32, i32) {
    %c0_i32 = arith.constant 0 : i32
    %c0_i32_0 = arith.constant 0 : i32
    return %arg0, %c0_i32 : i32, i32
  }
}

</mosaic_0001>

<bundles_post_ra>
// kernel: tpu_custom_call.1
= control target key start
LH: loop header
LB: loop body
LE: loop exit
PB: predicated region body
PF: predicated region fallthrough
CT: control target
= control target key end

     0   :  { %7 = vsyncpa [#allocation4], 0  ;;  %s1256_s0 = inlined_call_operand.hbm [shape: f32[640,128], index: 0, kind: input, shape index: {}]   ;;  %s1257_s1 = inlined_call_operand.hbm [shape: f32[128,128], index: 1, kind: input, shape index: {}]   ;;  %s1258_s2 = inlined_call_operand.hbm [shape: f32[640,128], index: 2, kind: output, shape index: {}]  }
   0x1   :  { %9 = vsyncpa [#allocation4 + $0x1], 0 }
   0x2   :  { %10 = vsyncpa [#allocation7], 0 }
   0x3   :  { %11 = vsyncpa [#allocation5], 0 }
   0x4   :  { %13 = vsyncpa [#allocation5 + $0x1], 0  ;;  %s992_s9 = smov 0   ;;  %s994_s10 = smov 0  }
   0x5   :  { %s996_s11 = smov 0   ;;  %s998_s12 = smov 0  }
   0x6   :  { %s1000_s13 = smov 0   ;;  %s1002_s14 = smov 0  }
   0x7 LB: > { %s592_s15 = sadd.s32 4294967295, %s968_s14   ;;  %s593_s16 = sadd.s32 4294967294, %s968_s14   ;;  %s968_s14 = sphi %s1002_s14, %s19_s14   ;;  %s964_s13 = sphi %s1000_s13, %s1281_s13   ;;  %s960_s12 = sphi %s998_s12, %s1280_s12   ;;  %s956_s11 = sphi %s996_s11, %s1279_s11   ;;  %s952_s10 = sphi %s994_s10, %s1278_s10   ;;  %s948_s9 = sphi %s992_s9, %s1277_s9  }
   0x8   : > { %p53_p0 = scmp.ne.s32.totalorder %s952_s10, %s948_s9  ;;  %p1026_p1 = scmp.eq.s32.totalorder %s592_s15, 0 }
   0x9   : > { %p1030_p2 = scmp.eq.s32.totalorder %s592_s15, 4  ;;  %p109_p3 = scmp.eq.s32.totalorder %s593_s16, 4 }
   0xa   : > { %s1263_s17 = scalar_select %p1026_p1, 1, 0 }
   0xb   : > { %s1264_s18 = scalar_select %p1030_p2, 1, 0 }
   0xc   : > { %p1036_p4 = por %p1026_p1, %p53_p0  ;;  %p594_p5 = scmp.ge.s32.totalorder %s968_s14, 1 }
   0xd   : > { %p1041_p6 = por %p109_p3, %p53_p0  ;;  %p116_p7 = scmp.lt.s32.totalorder %s968_s14, 6 }
   0xe   : > { %s1265_s19 = scalar_select %p1036_p4, 1, 0 }
   0xf   : > { %s1266_s20 = scalar_select %p1041_p6, 1, 0 }
  0x10   : > { %p1046_p8 = pnand %p594_p5, %p116_p7  ;;  %s970_s22 = smov [#allocation6]  }
  0x11   : > { %s131_s23 = sshll.u32 %s970_s22, 4  ;;  %s31_s25 = sadd.s32 1, %s964_s13  ;;  %s132_s23 = int_to_ptr.vmem [resolvable:$true] %s131_s23 }
  0x12   : > { %s1267_s21 = scalar_select %p1046_p8, 1, 0 }
  0x13   : > { %p755_p9 = pneg %p1046_p8  ;;  %s824_s28 = scalar_lea.hbm %s1257_s1, 2048 }
  0x14   : > { %p825_p11 = scmp.ne.s32.totalorder %s1257_s1, %s824_s28  ;;  %p831_p3 = scmp.lt.u32.totalorder %s824_s28, %s1257_s1 }
  0x15   : > { %p1054_p10 = pnand %p755_p9, %p1026_p1 }
  0x17   : > { %p826_p12 = pneg %p1054_p10 }
  0x19   : > { %p827_p13 = pnand %p826_p12, %p825_p11 }
  0x1b   : > { %p828_p0 = pneg %p827_p13 }
  0x1d   : > { %p833_p5 = pnand %p831_p3, %p828_p0 }
  0x1f   : > { %836 = shalt.err (!%p833_p5)
}
  0x20   : > { %s837_s5 = scalar_lea.vmem %s132_s23, 2048  ;;  %p845_p1 = scmp.lt.s32.totalorder %s132_s23, %s132_s23 }
  0x21   : > { %p838_p7 = scmp.ne.s32.totalorder %s132_s23, %s837_s5  ;;  %p846_p4 = scmp.lt.s32.totalorder %s837_s5, %s837_s5 }
  0x23   : > { %p840_p9 = pnand %p838_p7, %p826_p12  ;;  %p847_p8 = por %p846_p4, %p845_p1 }
  0x25   : > { %p841_p6 = pneg %p840_p9 }
  0x27   : > { %p848_p2 = pnand %p847_p8, %p841_p6 }
  0x29   : > { %851 = shalt.err (!%p848_p2)
}
  0x2a   : > { %s971_s6 = smov 128   ;;  %s972_s7 = smov 8  }
  0x2b   : > { %758 = dma.hbm_to_vmem [thread:$0]  (!%p1054_p10), %s1257_s1, 2048, %s132_s23, [#allocation7], %s971_s6, %s971_s6, %s972_s7  }
  0x2c   : > { %p33_p1 = scmp.ge.s32.totalorder %s31_s25, 5  ;;  %s40_s16 = sadd.s32 1, %s956_s11 }
  0x2d   : > { %p47_p2 = scmp.ne.s32.totalorder %s956_s11, %s952_s10  ;;  %p48_p4 = scmp.eq.s32.totalorder %s968_s14, 0 }
  0x2e   : > { %s1283_s25 = smov (%p33_p1, %s31_s25), 0  ;;  %p1270_p8 = scmp.ne.s32.totalorder %s1264_s18, 0 }
  0x2f   : > { %p1084_p6 = por %p48_p4, %p47_p2  ;;  %s35_s26 = ssub.s32 %s964_s13, %s1283_s25 }
  0x30   : > { %p1090_p11 = por %p1270_p8, %p47_p2  ;;  %p768_p12 = scmp.lt.s32.totalorder %s968_s14, 5 }
  0x31   : > { %p38_p10 = scmp.eq.s32.totalorder %s35_s26, 0  ;;  %s145_s23 = sand.u32 1, %s956_s11  }
  0x32   : > { %s597_s27 = sshll.u32 %s145_s23, 7  ;;  %s609_s29 = sshll.u32 %s964_s13, 11 }
  0x33   : > { %s1099_s28 = scalar_select %p38_p10, %s956_s11, %s40_s16  }
  0x34   : > { %s1105_s4 = scalar_lea.hbm %s1256_s0, %s609_s29  ;;  %s149_s18 = scalar_lea.vmem [#allocation3], %s597_s27 }
  0x35   : > { %s157_s5 = sshll.u32 %s149_s18, 4  ;;  %p1111_p13 = pnand %p768_p12, %p1084_p6  ;;  %s1107_s5 = int_to_ptr.vmem [resolvable:$true] %s157_s5 }
  0x36   : > { %s1115_s15 = scalar_lea.sflag [#allocation4], %s145_s23  ;;  %s852_s16 = scalar_lea.hbm %s1105_s4, 2048 }
  0x37   : > { %p853_p0 = scmp.ne.s32.totalorder %s1105_s4, %s852_s16  ;;  %p854_p3 = pneg %p1111_p13 }
  0x38   : > { %s857_s22 = scalar_lea.hbm %s1256_s0, 10240  ;;  %p858_p9 = scmp.lt.u32.totalorder %s1105_s4, %s1256_s0 }
  0x39   : > { %p855_p5 = pnand %p854_p3, %p853_p0  ;;  %p859_p1 = scmp.lt.u32.totalorder %s857_s22, %s852_s16 }
  0x3a   : > { %p861_p4 = scmp.lt.u32.totalorder %s852_s16, %s1105_s4 }
  0x3b   : > { %p856_p7 = pneg %p855_p5  ;;  %p860_p2 = por %p859_p1, %p858_p9 }
  0x3d   : > { %p862_p6 = por %p861_p4, %p860_p2 }
  0x3f   : > { %p863_p8 = pnand %p862_p6, %p856_p7 }
  0x41   : > { %866 = shalt.err (!%p863_p8)
}
  0x42   : > { %s867_s23 = scalar_lea.vmem %s1107_s5, 2048  ;;  %s973_s3 = smov [#allocation3]  }
  0x43   : > { %p868_p12 = scmp.ne.s32.totalorder %s1107_s5, %s867_s23  ;;  %s872_s18 = sshll.u32 %s973_s3, 4  ;;  %s873_s18 = int_to_ptr.vmem [resolvable:$false] %s872_s18 }
  0x44   : > { %s874_s26 = scalar_lea.vmem %s873_s18, 4096  ;;  %p875_p5 = scmp.lt.s32.totalorder %s1107_s5, %s873_s18 }
  0x45   : > { %p870_p10 = pnand %p868_p12, %p854_p3  ;;  %p876_p9 = scmp.lt.s32.totalorder %s874_s26, %s867_s23 }
  0x47   : > { %p871_p0 = pneg %p870_p10  ;;  %p877_p1 = por %p876_p9, %p875_p5 }
  0x49   : > { %p878_p2 = pnand %p877_p1, %p871_p0 }
  0x4b   : > { %881 = shalt.err (!%p878_p2)
}
  0x4c   : > { %762 = dma.hbm_to_vmem [thread:$0]  (!%p1111_p13), %s1105_s4, 2048, %s1107_s5, %s1115_s15, %s971_s6, %s971_s6, %s972_s7  }
  0x4d   : > { %p1273_p3 = scmp.ne.s32.totalorder %s1267_s21, 0 }
  0x4e   : > { %s1149_s16 = sand.u32 (!%p1273_p3), 1, %s952_s10   ;;  %p1274_p7 = scmp.ne.s32.totalorder (!%p1273_p3), %s1265_s19, 0 }
  0x4f   : > { %169 = sbr.rel (%p1273_p3) target bundleno = 365 (0x16d), region = 28  ;;  %s601_s27 = sshll.u32 (!%p1273_p3), %s1149_s16, 7 }
  0x50   : > { %s172_s22 = scalar_lea.sflag (!%p1273_p3), [#allocation4], %s1149_s16  ;;  %s1155_s8 = scalar_lea.vmem (!%p1273_p3), [#allocation3], %s601_s27 }
  0x56   : > { %935 = dma.done.wait (%p1274_p7), %s172_s22, 2048  }
  0x57   : > { %937 = vsyncadd (%p1274_p7), %s172_s22, 4294965248  ;;  %p1275_p13 = scmp.ne.s32.totalorder %s1263_s17, 0 }
  0x59   : > { %939 = dma.done.wait (%p1275_p13), [#allocation7], 2048  }
  0x5a   : > { %941 = vsyncadd (%p1275_p13), [#allocation7], 4294965248  ;;  %v255_v0 = vld [vmem:[#allocation6] sm:$0xff]  ;;  %v256_v1 = vld [vmem:[#allocation6 + $0x8] sm:$0xff]  ;;  %s1183_s17 = scalar_lea.vmem [#allocation8], %s601_s27  ;;  %s610_s19 = sshll.u32 %s960_s12, 11 }
  0x5b   : > { %v257_v2 = vld [vmem:[#allocation6 + $0x10] sm:$0xff]  ;;  %v699_v3 = vpack.c.bf16 %v256_v1, %v255_v0  ;;  %v258_v4 = vld [vmem:[#allocation6 + $0x18] sm:$0xff]  ;;  %v259_v6 = vld [vmem:[#allocation6 + $0x20] sm:$0xff]  ;;  %s497_s21 = sshll.u32 %s1183_s17, 4  ;;  %s1202_s4 = scalar_lea.hbm %s1258_s2, %s610_s19  ;;  %s1204_s21 = int_to_ptr.vmem [resolvable:$true] %s497_s21 }
  0x5c   : > { %v703_v5 = vpack.c.bf16 %v258_v4, %v257_v2  ;;  %v260_v7 = vld [vmem:[#allocation6 + $0x28] sm:$0xff]  ;;  %v239_v9 = vld [vmem:[%s1155_s8] sm:$0xff]  ;;  %v261_v11 = vld [vmem:[#allocation6 + $0x30] sm:$0xff]  ;;  %s484_s12 = scalar_lea.sflag [#allocation5], %s1149_s16  ;;  %s882_s5 = scalar_lea.vmem %s1204_s21, 2048 }
  0x5d   : > { %700 = vmatprep.subr.bf16.mxu0 %v699_v3  ;;  %731 = vmatprep.subr.bf16.mxu1 %v699_v3  ;;  %v707_v8 = vpack.c.bf16 %v260_v7, %v259_v6  ;;  %v247_v10 = vld [vmem:[%s1155_s8 + $0x40] sm:$0xff]  ;;  %v262_v12 = vld [vmem:[#allocation6 + $0x38] sm:$0xff]  ;;  %v264_v15 = vld [vmem:[#allocation6 + $0x48] sm:$0xff]  ;;  %p883_p4 = scmp.ne.s32.totalorder %s1204_s21, %s882_s5  ;;  %s974_s15 = smov [#allocation8]  }
  0x5e   : > { %702 = vmatpush3.bf16.msra.mxu0 %v699_v3  ;;  %739 = vmatpush3.bf16.msra.mxu1 %v699_v3  ;;  %v711_v13 = vpack.c.bf16 %v262_v12, %v261_v11  ;;  %v263_v14 = vld [vmem:[#allocation6 + $0x40] sm:$0xff]  ;;  %v265_v17 = vld [vmem:[#allocation6 + $0x50] sm:$0xff]  ;;  %v266_v18 = vld [vmem:[#allocation6 + $0x58] sm:$0xff]  ;;  %s886_s29 = sshll.u32 %s974_s15, 4  ;;  %s887_s29 = int_to_ptr.vmem [resolvable:$false] %s886_s29 }
  0x5f   : > { %704 = vmatprep.subr.bf16.mxu0 %v703_v5  ;;  %732 = vmatprep.subr.bf16.mxu1 %v703_v5  ;;  %v715_v16 = vpack.c.bf16 %v264_v15, %v263_v14  ;;  %v719_v19 = vpack.c.bf16 %v266_v18, %v265_v17  ;;  %v267_v20 = vld [vmem:[#allocation6 + $0x60] sm:$0xff]  ;;  %v268_v21 = vld [vmem:[#allocation6 + $0x68] sm:$0xff]  ;;  %v269_v23 = vld [vmem:[#allocation6 + $0x70] sm:$0xff]  ;;  %p884_p6 = pnand %p883_p4, %p1090_p11  ;;  %s888_s30 = scalar_lea.vmem %s887_s29, 4096 }
  0x60   : > { %675 = vmatprep.mubr.f32.mxu0 %v239_v9  ;;  %687 = vmatprep.mubr.f32.mxu1 %v247_v10  ;;  %v723_v22 = vpack.c.bf16 %v268_v21, %v267_v20  ;;  %v270_v24 = vld [vmem:[#allocation6 + $0x78] sm:$0xff]  ;;  %v240_v26 = vld [vmem:[%s1155_s8 + $0x8] sm:$0xff]  ;;  %v241_v28 = vld [vmem:[%s1155_s8 + $0x10] sm:$0xff]  ;;  %p889_p12 = scmp.lt.s32.totalorder %s1204_s21, %s887_s29  ;;  %p890_p10 = scmp.lt.s32.totalorder %s888_s30, %s882_s5 }
  0x61   : > { %v727_v25 = vpack.c.bf16 %v270_v24, %v269_v23  ;;  %v248_v27 = vld [vmem:[%s1155_s8 + $0x48] sm:$0xff]  ;;  %v249_v29 = vld [vmem:[%s1155_s8 + $0x50] sm:$0xff]  ;;  %v242_v30 = vld [vmem:[%s1155_s8 + $0x18] sm:$0xff]  ;;  %p885_p8 = pneg %p884_p6 }
  0x62   : > { %706 = vmatpush3.bf16.msra.mxu0 %v703_v5  ;;  %740 = vmatpush3.bf16.msra.mxu1 %v703_v5  ;;  %v250_v31 = vld [vmem:[%s1155_s8 + $0x58] sm:$0xff]  ;;  %v243_v32 = vld [vmem:[%s1155_s8 + $0x20] sm:$0xff]  ;;  %v244_v34 = vld [vmem:[%s1155_s8 + $0x28] sm:$0xff]  ;;  %p891_p0 = por %p890_p10, %p889_p12 }
  0x63   : > { %708 = vmatprep.subr.bf16.mxu0 %v707_v8  ;;  %733 = vmatprep.subr.bf16.mxu1 %v707_v8  ;;  %v251_v33 = vld [vmem:[%s1155_s8 + $0x60] sm:$0xff]  ;;  %v252_v35 = vld [vmem:[%s1155_s8 + $0x68] sm:$0xff]  ;;  %v245_v36 = vld [vmem:[%s1155_s8 + $0x30] sm:$0xff] }
  0x64   : > { %v253_v37 = vld [vmem:[%s1155_s8 + $0x70] sm:$0xff]  ;;  %v246_v38 = vld [vmem:[%s1155_s8 + $0x38] sm:$0xff]  ;;  %p892_p5 = pnand %p891_p0, %p885_p8 }
  0x65   : > { %v254_v39 = vld [vmem:[%s1155_s8 + $0x78] sm:$0xff] }
  0x66   : > { %710 = vmatpush3.bf16.msra.mxu0 %v707_v8  ;;  %741 = vmatpush3.bf16.msra.mxu1 %v707_v8 }
  0x67   : > { %712 = vmatprep.subr.bf16.mxu0 %v711_v13  ;;  %734 = vmatprep.subr.bf16.mxu1 %v711_v13 }
  0x6a   : > { %714 = vmatpush3.bf16.msra.mxu0 %v711_v13  ;;  %742 = vmatpush3.bf16.msra.mxu1 %v711_v13 }
  0x6b   : > { %716 = vmatprep.subr.bf16.mxu0 %v715_v16  ;;  %735 = vmatprep.subr.bf16.mxu1 %v715_v16 }
  0x6e   : > { %718 = vmatpush3.bf16.msra.mxu0 %v715_v16  ;;  %743 = vmatpush3.bf16.msra.mxu1 %v715_v16 }
  0x6f   : > { %720 = vmatprep.subr.bf16.mxu0 %v719_v19  ;;  %736 = vmatprep.subr.bf16.mxu1 %v719_v19 }
  0x72   : > { %722 = vmatpush3.bf16.msra.mxu0 %v719_v19  ;;  %744 = vmatpush3.bf16.msra.mxu1 %v719_v19 }
  0x73   : > { %724 = vmatprep.subr.bf16.mxu0 %v723_v22  ;;  %737 = vmatprep.subr.bf16.mxu1 %v723_v22 }
  0x76   : > { %726 = vmatpush3.bf16.msra.mxu0 %v723_v22  ;;  %745 = vmatpush3.bf16.msra.mxu1 %v723_v22 }
  0x77   : > { %728 = vmatprep.subr.bf16.mxu0 %v727_v25  ;;  %738 = vmatprep.subr.bf16.mxu1 %v727_v25 }
  0x7a   : > { %730 = vmatpush3.bf16.msra.mxu0 %v727_v25  ;;  %746 = vmatpush3.bf16.msra.mxu1 %v727_v25 }
  0x7d   : > { %676 = vmatmul.mubr.f32.vlgmr.msra.gmra.mrb[0].mxu0 %v240_v26  ;;  %688 = vmatmul.mubr.f32.vlgmr.msra.gmra.mrb[0].mxu1 %v248_v27 }
  0x7e   : > { %678 = vmatprep.mubr.f32.mxu0 %v241_v28  ;;  %690 = vmatprep.mubr.f32.mxu1 %v249_v29 }
  0x81   : > { %679 = vmatmul.mubr.f32.gmra.mrb[2].mxu0 %v242_v30  ;;  %691 = vmatmul.mubr.f32.gmra.mrb[2].mxu1 %v250_v31 }
  0x82   : > { %681 = vmatprep.mubr.f32.mxu0 %v243_v32  ;;  %693 = vmatprep.mubr.f32.mxu1 %v251_v33 }
  0x85   : > { %682 = vmatmul.mubr.f32.gmra.mrb[4].mxu0 %v244_v34  ;;  %694 = vmatmul.mubr.f32.gmra.mrb[4].mxu1 %v252_v35 }
  0x86   : > { %684 = vmatprep.mubr.f32.mxu0 %v245_v36  ;;  %696 = vmatprep.mubr.f32.mxu1 %v253_v37 }
  0x89   : > { %685 = vmatmul.mubr.f32.gmra.mrb[6].mxu0 %v246_v38  ;;  %697 = vmatmul.mubr.f32.gmra.mrb[6].mxu1 %v254_v39 }
 0x150   : > { %v677_v40 = vpop.f32.mrb[0].mxu0  ;;  %v689_v41 = vpop.f32.mrb[0].mxu1 }
 0x151   : > { %468 = vst [vmem:[%s1183_s17 + $0x8] sm:$0xff] %v677_v40  ;;  %476 = vst [vmem:[%s1183_s17 + $0x48] sm:$0xff] %v689_v41  ;;  %v337_v42 = vpop.f32.mrb[1].mxu0  ;;  %v377_v43 = vpop.f32.mrb[1].mxu1 }
 0x152   : > { %467 = vst [vmem:[%s1183_s17] sm:$0xff] %v337_v42  ;;  %475 = vst [vmem:[%s1183_s17 + $0x40] sm:$0xff] %v377_v43 }
 0x154   : > { %v680_v44 = vpop.f32.mrb[2].mxu0  ;;  %v692_v45 = vpop.f32.mrb[2].mxu1 }
 0x155   : > { %470 = vst [vmem:[%s1183_s17 + $0x18] sm:$0xff] %v680_v44  ;;  %478 = vst [vmem:[%s1183_s17 + $0x58] sm:$0xff] %v692_v45  ;;  %v347_v46 = vpop.f32.mrb[3].mxu0  ;;  %v387_v47 = vpop.f32.mrb[3].mxu1 }
 0x156   : > { %469 = vst [vmem:[%s1183_s17 + $0x10] sm:$0xff] %v347_v46  ;;  %477 = vst [vmem:[%s1183_s17 + $0x50] sm:$0xff] %v387_v47 }
 0x158   : > { %v683_v48 = vpop.f32.mrb[4].mxu0  ;;  %v695_v49 = vpop.f32.mrb[4].mxu1 }
 0x159   : > { %472 = vst [vmem:[%s1183_s17 + $0x28] sm:$0xff] %v683_v48  ;;  %480 = vst [vmem:[%s1183_s17 + $0x68] sm:$0xff] %v695_v49  ;;  %v357_v50 = vpop.f32.mrb[5].mxu0  ;;  %v397_v51 = vpop.f32.mrb[5].mxu1 }
 0x15a   : > { %471 = vst [vmem:[%s1183_s17 + $0x20] sm:$0xff] %v357_v50  ;;  %479 = vst [vmem:[%s1183_s17 + $0x60] sm:$0xff] %v397_v51 }
 0x15c   : > { %v686_v52 = vpop.f32.mrb[6].mxu0  ;;  %v698_v53 = vpop.f32.mrb[6].mxu1 }
 0x15d   : > { %474 = vst [vmem:[%s1183_s17 + $0x38] sm:$0xff] %v686_v52  ;;  %482 = vst [vmem:[%s1183_s17 + $0x78] sm:$0xff] %v698_v53  ;;  %v367_v54 = vpop.f32.mrb[7].mxu0  ;;  %v407_v55 = vpop.f32.mrb[7].mxu1 }
 0x15e   : > { %473 = vst [vmem:[%s1183_s17 + $0x30] sm:$0xff] %v367_v54  ;;  %481 = vst [vmem:[%s1183_s17 + $0x70] sm:$0xff] %v407_v55 }
 0x15f   : > { %895 = shalt.err (!%p892_p5)
}
 0x160   : > { %s896_s23 = scalar_lea.hbm %s1202_s4, 2048  ;;  %s900_s26 = scalar_lea.hbm %s1258_s2, 10240 }
 0x161   : > { %p897_p9 = scmp.ne.s32.totalorder %s1202_s4, %s896_s23  ;;  %p901_p3 = scmp.lt.u32.totalorder %s1202_s4, %s1258_s2 }
 0x162   : > { %p902_p7 = scmp.lt.u32.totalorder %s900_s26, %s896_s23  ;;  %p904_p4 = scmp.lt.u32.totalorder %s896_s23, %s1202_s4 }
 0x163   : > { %p898_p1 = pnand %p897_p9, %p1090_p11 }
 0x164   : > { %p903_p13 = por %p902_p7, %p901_p3 }
 0x165   : > { %p899_p2 = pneg %p898_p1 }
 0x166   : > { %p905_p6 = por %p904_p4, %p903_p13 }
 0x168   : > { %p906_p8 = pnand %p905_p6, %p899_p2 }
 0x16a   : > { %909 = shalt.err (!%p906_p8)
}
 0x16b   : > { %s975_s8 = smov 128   ;;  %s976_s17 = smov 8  }
 0x16c   : > { %753 = dma.vmem_to_hbm [thread:$0]  (%p1090_p11), %s1204_s21, 2048, %s1202_s4, %s484_s12, %s975_s8, %s975_s8, %s976_s17  }
 0x16d PF: > { %p770_p12 = scmp.ge.s32.totalorder %s968_s14, 2  ;;  %s512_s19 = sand.u32 1, %s948_s9  }
 0x16e   : > { %p1276_p10 = scmp.ne.s32.totalorder %s1266_s20, 0  ;;  %s513_s6 = scalar_lea.sflag [#allocation5], %s512_s19 }
 0x170   : > { %p764_p0 = pnand %p770_p12, %p1276_p10 }
 0x172   : > { %943 = dma.done.wait (!%p764_p0), %s513_s6, 2048  }
 0x173   : > { %945 = vsyncadd (!%p764_p0), %s513_s6, 4294965248  ;;  %s19_s14 = sadd.s32 1, %s968_s14   ;;  %s1277_s9 = smov %s952_s10 }
 0x174   : > { %p16_p5 = scmp.ge.s32.totalorder %s19_s14, 7   ;;  %s1278_s10 = smov %s956_s11 }
 0x175   : > { %s1279_s11 = smov %s1099_s28  ;;  %s1280_s12 = smov %s964_s13 }
 0x176   : > { %s1281_s13 = smov %s1283_s25  ;;  %18 = sbr.rel (!%p16_p5) target bundleno = 7 (0x7), region = 86 }
 0x17d   :  { %518 = vsyncpa [#allocation4], 1 }
 0x17e   :  { %520 = vsyncpa [#allocation4 + $0x1], 1 }
 0x17f   :  { %521 = vsyncpa [#allocation7], 1 }
 0x180   :  { %522 = vsyncpa [#allocation5], 1 }
 0x181   :  { %524 = vsyncpa [#allocation5 + $0x1], 1 }

</bundles_post_ra>
